<compile_context>
chip_gen: v6e
topology: v6e:2x2x1
jax: 0.10.0
libtpu: 0.0.40
codegen_flags: <defaults>
</compile_context>

<pallas_src>
import functools

import jax
import jax.numpy as jnp
from jax import lax
from jax.experimental import pallas as pl
from jax.experimental.pallas import tpu as pltpu

LANE = 128
SUBLANE = 8          # f32 accumulator sublane tile
CHUNK_ROWS = 256     # inner-loop chunk (multiple of 32 -> valid for all dtypes)


def _round_up(a, b):
    return ((a + b - 1) // b) * b


def _min_sublanes(*dtypes):
    """Dtype-dependent minimum sublane tile: f32->8, bf16->16, int8/fp8->32."""
    table = {4: 8, 2: 16, 1: 32}
    return max(table.get(jnp.dtype(d).itemsize, 8) for d in dtypes)


def _device_kind():
    try:
        return jax.devices()[0].device_kind.lower()
    except Exception:  # pragma: no cover
        return ""


def _block_sumsq(x_ref, y_ref, row_off, rows, block_rows, chunk_rows, masked):
    """sum((x-y)^2) over this block, folded into an (8,128) vreg carry."""
    n_chunks = block_rows // chunk_rows

    def body(i, acc):
        off = pl.multiple_of(i * chunk_rows, chunk_rows)
        xd = x_ref[pl.ds(off, chunk_rows), :].astype(jnp.float32)
        yd = y_ref[pl.ds(off, chunk_rows), :].astype(jnp.float32)
        d = xd - yd
        d2 = d * d
        if masked:
            # Undefined contents past `rows` (partial / clamped blocks) are
            # discarded here; jnp.where after squaring also drops NaN garbage.
            row_ids = (row_off + off) + lax.broadcasted_iota(jnp.int32, d2.shape, 0)
            d2 = jnp.where(row_ids < rows, d2, 0.0)
        # (chunk,128)->(g,8,128) sum over g is pure per-vreg VPU adds.
        return acc + d2.reshape(-1, SUBLANE, LANE).sum(axis=0)

    return lax.fori_loop(0, n_chunks, body, jnp.zeros((SUBLANE, LANE), jnp.float32))


def _rmse_partial_kernel(x_ref, y_ref, o_ref, acc_ref, *, rows, block_rows, chunk_rows):
    """Accumulates sum((x - y)^2) for this partial's slice of row-blocks."""
    p = pl.program_id(0)      # partials axis (core-parallel on v7x)
    k = pl.program_id(1)      # reduction axis (row-block index within partial)
    kpc = pl.num_programs(1)

    @pl.when(k == 0)
    def _():
        acc_ref[...] = jnp.zeros_like(acc_ref)

    row_off = (p * kpc + k) * block_rows
    is_tail = row_off + block_rows > rows   # partial last block or clamped re-read

    @pl.when(jnp.logical_not(is_tail))
    def _():
        acc_ref[...] += _block_sumsq(
            x_ref, y_ref, row_off, rows, block_rows, chunk_rows, masked=False)

    @pl.when(is_tail)
    def _():
        acc_ref[...] += _block_sumsq(
            x_ref, y_ref, row_off, rows, block_rows, chunk_rows, masked=True)

    @pl.when(k == kpc - 1)
    def _():
        o_ref[0, 0] = jnp.sum(acc_ref[...])


def rmse_loss(x, y, *, block_rows=None):
    """sqrt(mean((x - y)^2)) over all elements (== torch.sqrt(nn.MSELoss()(x, y)))."""
    assert x.shape == y.shape, "x and y must have the same shape"
    n = x.size

    xf = x.reshape(-1)   # contiguous flatten: free
    yf = y.reshape(-1)

    rows = n // LANE
    rem = n - rows * LANE

    # <=127-element tail handled with plain JAX in the wrapper (no pad copy).
    if rem:
        tx = lax.slice_in_dim(xf, rows * LANE, n).astype(jnp.float32)
        ty = lax.slice_in_dim(yf, rows * LANE, n).astype(jnp.float32)
        tail_sse = jnp.sum((tx - ty) ** 2)
    else:
        tail_sse = jnp.float32(0.0)

    if rows == 0:
        return jnp.sqrt(tail_sse / jnp.float32(n))

    if rem:
        xf = lax.slice_in_dim(xf, 0, rows * LANE)
        yf = lax.slice_in_dim(yf, 0, rows * LANE)
    x2d = xf.reshape(rows, LANE)
    y2d = yf.reshape(rows, LANE)

    kind = _device_kind()
    is_v7 = ("v7" in kind) or ("7x" in kind) or ("tpu7" in kind)
    is_v5 = "v5" in kind
    itemsize = max(jnp.dtype(x.dtype).itemsize, jnp.dtype(y.dtype).itemsize)

    if block_rows is None:
        # Per-input tile bytes: 2 MiB on v5e (16 MiB scoped default),
        # 4 MiB on v6e/v7x (32 MiB scoped default); double-buffered x 2 inputs.
        target_bytes = (2 << 20) if is_v5 else (4 << 20)
        block_rows = max(CHUNK_ROWS, target_bytes // (LANE * itemsize))

    min_sub = _min_sublanes(x.dtype, y.dtype)
    if rows <= CHUNK_ROWS:
        block_rows_eff = _round_up(rows, min_sub)
        chunk_rows_eff = block_rows_eff
    else:
        block_rows_eff = min(_round_up(block_rows, CHUNK_ROWS),
                             _round_up(rows, CHUNK_ROWS))
        chunk_rows_eff = CHUNK_ROWS

    num_blocks = pl.cdiv(rows, block_rows_eff)

    def run(num_partials, dim_sems):
        kpc = pl.cdiv(num_blocks, num_partials)

        def in_index(p, k):
            # Clamp a partial's trailing out-of-range blocks to the last valid
            # block (no OOB DMA); the kernel's unclamped row mask zeroes them.
            return (jnp.minimum(p * kpc + k, num_blocks - 1), 0)

        cost = pl.CostEstimate(
            flops=3 * rows * LANE,
            transcendentals=0,
            bytes_accessed=rows * LANE * (jnp.dtype(x.dtype).itemsize
                                          + jnp.dtype(y.dtype).itemsize)
            + num_partials * 4,
        )
        return pl.pallas_call(
            functools.partial(_rmse_partial_kernel, rows=rows,
                              block_rows=block_rows_eff,
                              chunk_rows=chunk_rows_eff),
            out_shape=jax.ShapeDtypeStruct((num_partials, 1), jnp.float32),
            grid_spec=pltpu.PrefetchScalarGridSpec(
                num_scalar_prefetch=0,
                grid=(num_partials, kpc),
                in_specs=[pl.BlockSpec((block_rows_eff, LANE), in_index),
                          pl.BlockSpec((block_rows_eff, LANE), in_index)],
                out_specs=pl.BlockSpec((1, 1), lambda p, k: (p, 0),
                                       memory_space=pltpu.SMEM),
                scratch_shapes=[pltpu.VMEM((SUBLANE, LANE), jnp.float32)],
            ),
            compiler_params=pltpu.CompilerParams(dimension_semantics=dim_sems),
            cost_estimate=cost,
        )(x2d, y2d)

    # v7x: real 2-TensorCore split needs CORE_PARALLEL (plain "parallel" does
    # not shard cores).  Single-TC chips: 1 partial, no wasted clamped block.
    configs = []
    if is_v7 and hasattr(pltpu, "CORE_PARALLEL"):
        configs.append((2, (pltpu.CORE_PARALLEL, pltpu.ARBITRARY)))
    configs.append((1, ("arbitrary", "arbitrary")))

    partials, err = None, None
    for num_partials, sems in configs:
        try:
            partials = run(num_partials, sems)
            break
        except Exception as e:  # fall back to the portable single-partial config
            err = e
    if partials is None:
        raise err

    sse = jnp.sum(partials[:, 0]) + tail_sse
    return jnp.sqrt(sse / jnp.float32(n))


if __name__ == "__main__":
    key = jax.random.PRNGKey(0)
    kx, ky = jax.random.split(key)
    # Small shapes consistent with a typical NCHW activation tensor.
    x = jax.random.normal(kx, (2, 4, 16, 16), dtype=jnp.float32)
    y = jax.random.normal(ky, (2, 4, 16, 16), dtype=jnp.float32)

    loss = jax.block_until_ready(rmse_loss(x, y))

    # Reference check against plain JAX.
    ref = jnp.sqrt(jnp.mean((x - y) ** 2))
    assert jnp.allclose(loss, ref, rtol=1e-5, atol=1e-6), (loss, ref)

    print("KERNEL_OK")
</pallas_src>

<mosaic_0001>
module attributes {stable_mosaic.version = 11 : i64} {
  func.func @_rmse_partial_kernel(%arg0: i32, %arg1: i32, %arg2: memref<16x128xf32, #tpu.memory_space<vmem>>, %arg3: memref<16x128xf32, #tpu.memory_space<vmem>>, %arg4: memref<1x1xf32, #tpu.memory_space<smem>>, %arg5: memref<8x128xf32, #tpu.memory_space<vmem>>) attributes {dimension_semantics = [#tpu.dimension_semantics<arbitrary>, #tpu.dimension_semantics<arbitrary>], iteration_bounds = array<i64: 1, 1>, scalar_prefetch = 0 : i64, scratch_operands = 1 : i64, tpu.core_type = #tpu.core_type<tc>, window_params = [{transform_indices = @transform_0, window_bounds = array<i64: 16, 128>}, {transform_indices = @transform_1, window_bounds = array<i64: 16, 128>}, {transform_indices = @transform_2, window_bounds = array<i64: 1, 1>}]} {
    %c0_i32 = arith.constant 0 : i32
    %0 = arith.cmpi eq, %arg1, %c0_i32 : i32
    %1 = arith.extui %0 : i1 to i32
    %c0_i32_0 = arith.constant 0 : i32
    %2 = arith.cmpi ne, %1, %c0_i32_0 : i32
    scf.if %2 {
      %cst = arith.constant 0.000000e+00 : f32
      %16 = vector.broadcast %cst : f32 to vector<8x128xf32>
      %c0 = arith.constant 0 : index
      %c0_7 = arith.constant 0 : index
      %17 = vector.load %arg5[%c0, %c0_7] : memref<8x128xf32, #tpu.memory_space<vmem>>, vector<8x128xf32>
      tpu.vector_store %arg5[%c0, %c0_7], %16 {strides = array<i32>} : memref<8x128xf32, #tpu.memory_space<vmem>>, vector<8x128xf32>,
    } else {
    }
    %c1_i32 = arith.constant 1 : i32
    %3 = arith.muli %arg0, %c1_i32 : i32
    %4 = arith.addi %3, %arg1 : i32
    %c16_i32 = arith.constant 16 : i32
    %5 = arith.muli %4, %c16_i32 : i32
    %c16_i32_1 = arith.constant 16 : i32
    %6 = arith.addi %5, %c16_i32_1 : i32
    %c16_i32_2 = arith.constant 16 : i32
    %7 = arith.cmpi sgt, %6, %c16_i32_2 : i32
    %true = arith.constant true
    %8 = arith.xori %7, %true : i1
    %9 = arith.extui %8 : i1 to i32
    %c0_i32_3 = arith.constant 0 : i32
    %10 = arith.cmpi ne, %9, %c0_i32_3 : i32
    scf.if %10 {
      %c0 = arith.constant 0 : index
      %c0_7 = arith.constant 0 : index
      %16 = vector.load %arg5[%c0, %c0_7] : memref<8x128xf32, #tpu.memory_space<vmem>>, vector<8x128xf32>
      %cst = arith.constant 0.000000e+00 : f32
      %17 = vector.broadcast %cst : f32 to vector<8x128xf32>
      %c0_i32_8 = arith.constant 0 : i32
      %c16_i32_9 = arith.constant 16 : i32
      %18 = arith.muli %c0_i32_8, %c16_i32_9 : i32
      %19 = tpu.assume_multiple %18, 16 : i32
      %20 = arith.index_cast %19 : i32 to index
      %c0_10 = arith.constant 0 : index
      %21 = vector.load %arg2[%20, %c0_10] : memref<16x128xf32, #tpu.memory_space<vmem>>, vector<16x128xf32>
      %22 = arith.index_cast %19 : i32 to index
      %c0_11 = arith.constant 0 : index
      %23 = vector.load %arg3[%22, %c0_11] : memref<16x128xf32, #tpu.memory_space<vmem>>, vector<16x128xf32>
      %24 = arith.subf %21, %23 : vector<16x128xf32>
      %25 = arith.mulf %24, %24 : vector<16x128xf32>
      %26 = vector.shape_cast %25 : vector<16x128xf32> to vector<2x8x128xf32>
      %cst_12 = arith.constant dense<0.000000e+00> : vector<8x128xf32>
      %27 = vector.multi_reduction <add>, %26, %cst_12 [0] : vector<2x8x128xf32> to vector<8x128xf32>
      %28 = arith.addf %17, %27 : vector<8x128xf32>
      %c1_i32_13 = arith.constant 1 : i32
      %29 = arith.addf %16, %28 : vector<8x128xf32>
      %c0_14 = arith.constant 0 : index
      %c0_15 = arith.constant 0 : index
      %30 = vector.load %arg5[%c0_14, %c0_15] : memref<8x128xf32, #tpu.memory_space<vmem>>, vector<8x128xf32>
      tpu.vector_store %arg5[%c0_14, %c0_15], %29 {strides = array<i32>} : memref<8x128xf32, #tpu.memory_space<vmem>>, vector<8x128xf32>,
    } else {
    }
    %11 = arith.extui %7 : i1 to i32
    %c0_i32_4 = arith.constant 0 : i32
    %12 = arith.cmpi ne, %11, %c0_i32_4 : i32
    scf.if %12 {
      %c0 = arith.constant 0 : index
      %c0_7 = arith.constant 0 : index
      %16 = vector.load %arg5[%c0, %c0_7] : memref<8x128xf32, #tpu.memory_space<vmem>>, vector<8x128xf32>
      %cst = arith.constant 0.000000e+00 : f32
      %17 = vector.broadcast %cst : f32 to vector<8x128xf32>
      %c0_i32_8 = arith.constant 0 : i32
      %c16_i32_9 = arith.constant 16 : i32
      %18 = arith.muli %c0_i32_8, %c16_i32_9 : i32
      %19 = tpu.assume_multiple %18, 16 : i32
      %20 = arith.index_cast %19 : i32 to index
      %c0_10 = arith.constant 0 : index
      %21 = vector.load %arg2[%20, %c0_10] : memref<16x128xf32, #tpu.memory_space<vmem>>, vector<16x128xf32>
      %22 = arith.index_cast %19 : i32 to index
      %c0_11 = arith.constant 0 : index
      %23 = vector.load %arg3[%22, %c0_11] : memref<16x128xf32, #tpu.memory_space<vmem>>, vector<16x128xf32>
      %24 = arith.subf %21, %23 : vector<16x128xf32>
      %25 = arith.mulf %24, %24 : vector<16x128xf32>
      %26 = arith.addi %5, %19 : i32
      %27 = tpu.iota {dimensions = array<i32: 0>} : vector<16x128xi32>
      %28 = vector.broadcast %26 : i32 to vector<16x128xi32>
      %29 = arith.addi %28, %27 : vector<16x128xi32>
      %c16_i32_12 = arith.constant 16 : i32
      %30 = vector.broadcast %c16_i32_12 : i32 to vector<16x128xi32>
      %31 = arith.cmpi slt, %29, %30 : vector<16x128xi32>
      %cst_13 = arith.constant 0.000000e+00 : f32
      %32 = vector.broadcast %cst_13 : f32 to vector<16x128xf32>
      %33 = arith.select %31, %25, %32 : vector<16x128xi1>, vector<16x128xf32>
      %34 = vector.shape_cast %33 : vector<16x128xf32> to vector<2x8x128xf32>
      %cst_14 = arith.constant dense<0.000000e+00> : vector<8x128xf32>
      %35 = vector.multi_reduction <add>, %34, %cst_14 [0] : vector<2x8x128xf32> to vector<8x128xf32>
      %36 = arith.addf %17, %35 : vector<8x128xf32>
      %c1_i32_15 = arith.constant 1 : i32
      %37 = arith.addf %16, %36 : vector<8x128xf32>
      %c0_16 = arith.constant 0 : index
      %c0_17 = arith.constant 0 : index
      %38 = vector.load %arg5[%c0_16, %c0_17] : memref<8x128xf32, #tpu.memory_space<vmem>>, vector<8x128xf32>
      tpu.vector_store %arg5[%c0_16, %c0_17], %37 {strides = array<i32>} : memref<8x128xf32, #tpu.memory_space<vmem>>, vector<8x128xf32>,
    } else {
    }
    %c0_i32_5 = arith.constant 0 : i32
    %13 = arith.cmpi eq, %arg1, %c0_i32_5 : i32
    %14 = arith.extui %13 : i1 to i32
    %c0_i32_6 = arith.constant 0 : i32
    %15 = arith.cmpi ne, %14, %c0_i32_6 : i32
    scf.if %15 {
      %c0 = arith.constant 0 : index
      %c0_7 = arith.constant 0 : index
      %16 = vector.load %arg5[%c0, %c0_7] : memref<8x128xf32, #tpu.memory_space<vmem>>, vector<8x128xf32>
      %17 = vector.shape_cast %16 : vector<8x128xf32> to vector<1x8x128xf32>
      %cst = arith.constant dense<0.000000e+00> : vector<1xf32>
      %18 = vector.multi_reduction <add>, %17, %cst [1, 2] : vector<1x8x128xf32> to vector<1xf32>
      %19 = vector.shape_cast %18 : vector<1xf32> to vector<1x1x1xf32>
      %20 = vector.extract %19[0, 0, 0] : f32 from vector<1x1x1xf32>
      %c0_8 = arith.constant 0 : index
      %c0_9 = arith.constant 0 : index
      %21 = memref.load %arg4[%c0_8, %c0_9] : memref<1x1xf32, #tpu.memory_space<smem>>
      memref.store %20, %arg4[%c0_8, %c0_9] : memref<1x1xf32, #tpu.memory_space<smem>>
    } else {
    }
    return
  }
  func.func @transform_0(%arg0: i32, %arg1: i32) -> (i32, i32) {
    %c1_i32 = arith.constant 1 : i32
    %0 = arith.muli %arg0, %c1_i32 : i32
    %1 = arith.addi %0, %arg1 : i32
    %c0_i32 = arith.constant 0 : i32
    %2 = arith.minsi %1, %c0_i32 : i32
    %c0_i32_0 = arith.constant 0 : i32
    %c0_i32_1 = arith.constant 0 : i32
    return %2, %c0_i32_0 : i32, i32
  }
  func.func @transform_1(%arg0: i32, %arg1: i32) -> (i32, i32) {
    %c1_i32 = arith.constant 1 : i32
    %0 = arith.muli %arg0, %c1_i32 : i32
    %1 = arith.addi %0, %arg1 : i32
    %c0_i32 = arith.constant 0 : i32
    %2 = arith.minsi %1, %c0_i32 : i32
    %c0_i32_0 = arith.constant 0 : i32
    %c0_i32_1 = arith.constant 0 : i32
    return %2, %c0_i32_0 : i32, i32
  }
  func.func @transform_2(%arg0: i32, %arg1: i32) -> (i32, i32) {
    %c0_i32 = arith.constant 0 : i32
    %c0_i32_0 = arith.constant 0 : i32
    return %arg0, %c0_i32 : i32, i32
  }
}

</mosaic_0001>

<bundles_post_ra>
// kernel: tpu_custom_call.1
= control target key start
LH: loop header
LB: loop body
LE: loop exit
PB: predicated region body
PF: predicated region fallthrough
CT: control target
= control target key end

     0   :  { %7 = vsyncpa [#allocation4], 0  ;;  %s237_s0 = inlined_call_operand.hbm [shape: f32[16,128], index: 0, kind: input, shape index: {}]   ;;  %s238_s1 = inlined_call_operand.hbm [shape: f32[16,128], index: 1, kind: input, shape index: {}]   ;;  %s239_s2 = inlined_call_operand.hbm [shape: f32[1,1], index: 2, kind: output, shape index: {}]  }
   0x1   :  { %8 = vsyncpa [#allocation7], 0 }
   0x2   :  { %9 = vsyncpa [#allocation5], 0  ;;  %s208_s9 = smov [#allocation3]  }
   0x3   :  { %s21_s10 = sshll.u32 %s208_s9, 4  ;;  %s22_s10 = int_to_ptr.vmem [resolvable:$true] %s21_s10 }
   0x4   :  { %s162_s11 = scalar_lea.vmem %s22_s10, 256  ;;  %p167_p1 = scmp.lt.s32.totalorder %s22_s10, %s22_s10 }
   0x5   :  { %p163_p0 = scmp.ne.s32.totalorder %s22_s10, %s162_s11  ;;  %p168_p2 = scmp.lt.s32.totalorder %s162_s11, %s162_s11 }
   0x7   :  { %p169_p3 = por %p168_p2, %p167_p1 }
   0x9   :  { %p170_p4 = pnand %p169_p3, %p163_p0 }
   0xb   :  { %173 = shalt.err (!%p170_p4)
}
   0xc   :  { %s209_s12 = smov 128   ;;  %s210_s13 = smov 8  }
   0xd   :  { %27 = dma.hbm_to_vmem [thread:$0]  %s237_s0, 256, %s22_s10, [#allocation4], %s209_s12, %s209_s12, %s210_s13  }
   0xe   :  { %s211_s16 = smov [#allocation6]  }
   0xf   :  { %s39_s17 = sshll.u32 %s211_s16, 4  ;;  %s40_s17 = int_to_ptr.vmem [resolvable:$true] %s39_s17 }
  0x10   :  { %s182_s18 = scalar_lea.vmem %s40_s17, 256  ;;  %p187_p6 = scmp.lt.s32.totalorder %s40_s17, %s40_s17 }
  0x11   :  { %p183_p5 = scmp.ne.s32.totalorder %s40_s17, %s182_s18  ;;  %p188_p7 = scmp.lt.s32.totalorder %s182_s18, %s182_s18 }
  0x13   :  { %p189_p8 = por %p188_p7, %p187_p6 }
  0x15   :  { %p190_p9 = pnand %p189_p8, %p183_p5 }
  0x17   :  { %193 = shalt.err (!%p190_p9)
}
  0x18   :  { %45 = dma.hbm_to_vmem [thread:$0]  %s238_s1, 256, %s40_s17, [#allocation7], %s209_s12, %s209_s12, %s210_s13  }
  0x19   :  { %202 = dma.done.wait [#allocation4], 256  }
  0x1a   :  { %203 = vsyncadd [#allocation4], 4294967040 }
  0x1b   :  { %204 = dma.done.wait [#allocation7], 256  }
  0x1c   :  { %205 = vsyncadd [#allocation7], 4294967040  ;;  %v74_v0 = vld [vmem:[#allocation3] sm:$0xff]  ;;  %v75_v1 = vld [vmem:[#allocation3 + $0x8] sm:$0xff]  ;;  %s212_s1 = smov [#allocation8]  }
  0x1d   :  { %v76_v2 = vld [vmem:[#allocation6] sm:$0xff]  ;;  %v77_v3 = vld [vmem:[#allocation6 + $0x8] sm:$0xff] }
  0x1e   :  { %v78_v4 = vsub.f32 %v74_v0, %v76_v2  ;;  %v79_v5 = vsub.f32 %v75_v1, %v77_v3 }
  0x20   :  { %v80_v6 = vmul.f32 %v78_v4, %v78_v4  ;;  %v81_v7 = vmul.f32 %v79_v5, %v79_v5 }
  0x22   :  { %v82_v8 = vadd.f32 %v81_v7, %v80_v6 }
  0x24   :  { %117 = vadd.xlane.f32.xlu0 %v82_v8 }
  0xad   :  { %v118_v9 = vpop.xlane.xlu0 %117 }
  0xae   :  { %v119_v10 = vrot.slane %v118_v9, 4 }
  0xb0   :  { %v120_v11 = vadd.f32 %v119_v10, %v118_v9 }
  0xb2   :  { %v121_v12 = vrot.slane %v120_v11, 2 }
  0xb4   :  { %v122_v13 = vadd.f32 %v121_v12, %v120_v11 }
  0xb6   :  { %v123_v14 = vrot.slane %v122_v13, 1 }
  0xb8   :  { %v124_v15 = vadd.f32 %v123_v14, %v122_v13 }
  0xba   :  { %147 = vpush %v124_v15 }
  0xeb   :  { %s148_s0 = spop %147 }
  0xec   :  { %127 = sst [smem:[#allocation8]] %s148_s0 }
  0xed   :  { %135 = dma.smem_to_hbm %s212_s1, 16, %s239_s2, [#allocation5]  }
  0xee   :  { %206 = dma.done.wait [#allocation5], 16  }
  0xef   :  { %207 = vsyncadd [#allocation5], 4294967280 }
  0xf0   :  { %139 = sfence }
  0xf1   :  { %140 = vsyncpa [#allocation4], 1 }
  0xf2   :  { %141 = vsyncpa [#allocation7], 1 }
  0xf3   :  { %142 = vsyncpa [#allocation5], 1 }

</bundles_post_ra>
